<compile_context>
chip_gen: v7x
topology: tpu7x:2x2x1
jax: 0.10.0
libtpu: 0.0.40
codegen_flags: <defaults>
</compile_context>

<pallas_src>
import jax
import jax.numpy as jnp
from jax.experimental import pallas as pl
from jax.experimental.pallas import tpu as pltpu

_LANE = 128                 # lane width: last dim of every block
_MAX_TILE_R = 2048          # max sublane rows per tile (2048*128*4 B = 1 MiB/plane)
_PALLAS_MIN_BATCH = 1 << 17 # below this, a plain XLA fusion has lower fixed cost


def _round_up(n, m):
    return -(-n // m) * m


def _pn_neuron_kernel(c_ref, x_ref, o_ref):
    # c_ref : (6,)              f32 SMEM  [c00, c01, c02, c11, c12, c22]
    # x_ref : (2, tile_r, 128)  f32 VMEM  feature-major packed x
    # o_ref : (tile_r, 128)     f32 VMEM
    x0 = x_ref[0]
    x1 = x_ref[1]
    c00 = c_ref[0]
    c01 = c_ref[1]
    c02 = c_ref[2]
    c11 = c_ref[3]
    c12 = c_ref[4]
    c22 = c_ref[5]
    # z^T M z with z = [x0, x1, 1], fully expanded (5 mul + 5 add per element).
    out = (c00 * x0 + c01 * x1 + c02) * x0 + (c11 * x1 + c12) * x1 + c22
    o_ref[...] = out.astype(o_ref.dtype)


def _quad_coeffs(W, mask):
    # z^T M z == c00*x0^2 + c01*x0*x1 + c02*x0 + c11*x1^2 + c12*x1 + c22
    # Symmetric terms are folded, so this is exact for any masked M.
    M = (W * mask).astype(jnp.float32)
    return jnp.stack([M[0, 0],
                      M[0, 1] + M[1, 0],
                      M[0, 2] + M[2, 0],
                      M[1, 1],
                      M[1, 2] + M[2, 1],
                      M[2, 2]])


@jax.jit
def _pn_neuron_pallas(x, W, mask):
    B = x.shape[0]
    x = x.astype(jnp.float32)
    coeffs = _quad_coeffs(W, mask)

    # Lane-dense, feature-major packing: (B,2) -> (2, rp, 128) in a single
    # fused pad+transpose copy (under jit) instead of two stride-2 gathers.
    r = max(pl.cdiv(B, _LANE), 1)                 # 128-wide rows of batch
    grid_n = pl.cdiv(r, _MAX_TILE_R)
    if grid_n == 1 and r >= 16:
        grid_n = 2                                # let v7x's 2 TCs split the work
    tile_r = _round_up(pl.cdiv(r, grid_n), 8)     # (8,128) block constraint
    rp = grid_n * tile_r                          # waste capped at <8 rows/tile
    bp = rp * _LANE

    x_pad = jnp.pad(x, ((0, bp - B), (0, 0)))
    x_packed = x_pad.T.reshape(2, rp, _LANE)

    out = pl.pallas_call(
        _pn_neuron_kernel,
        out_shape=jax.ShapeDtypeStruct((rp, _LANE), jnp.float32),
        grid_spec=pltpu.PrefetchScalarGridSpec(
            num_scalar_prefetch=0,
            grid=(grid_n,),
            in_specs=[
                pl.BlockSpec(memory_space=pltpu.MemorySpace.SMEM),      # coeffs
                pl.BlockSpec((2, tile_r, _LANE), lambda i: (0, i, 0)),  # packed x
            ],
            out_specs=pl.BlockSpec((tile_r, _LANE), lambda i: (i, 0)),
        ),
        compiler_params=pltpu.CompilerParams(
            dimension_semantics=("parallel",)),   # batch axis is independent
    )(coeffs, x_packed)

    # Epilogue fuses under jit: drop padding, restore PyTorch (B, 1) shape.
    return out.reshape(bp)[:B].reshape(B, 1)


@jax.jit
def _pn_neuron_xla(x, W, mask):
    # Small-batch fallback: one XLA elementwise fusion, no pallas_call overhead.
    c = _quad_coeffs(W, mask)
    x0 = x[:, 0].astype(jnp.float32)
    x1 = x[:, 1].astype(jnp.float32)
    out = (c[0] * x0 + c[1] * x1 + c[2]) * x0 + (c[3] * x1 + c[4]) * x1 + c[5]
    return out[:, None]


def pn_neuron_forward(x, W, mask, use_pallas=None):
    """x: (B, 2), W: (3, 3), mask: (3, 3) -> (B, 1) f32 (== PN_Neuron.forward)."""
    if use_pallas is None:
        use_pallas = x.shape[0] >= _PALLAS_MIN_BATCH
    if use_pallas:
        return _pn_neuron_pallas(x, W, mask)
    return _pn_neuron_xla(x, W, mask)


def init_params():
    # Deterministic synthetic init mirroring nn.Parameter(torch.randn(3,3))
    # with the lower-triangular entries zeroed in __init__.
    key = jax.random.PRNGKey(0)
    W = jax.random.normal(key, (3, 3), dtype=jnp.float32)
    W = W.at[1, 0].set(0.0).at[2, 0].set(0.0).at[2, 1].set(0.0)
    mask = jnp.triu(jnp.ones((3, 3), dtype=jnp.float32))
    return W, mask


# TODO(synk): W.register_hook(grad * mask) is a backward-pass gradient mask; it has
#             no forward-pass equivalent and is intentionally not implemented here.
# TODO(synk): symbolic_forward uses sympy (host-side symbolic math); no Pallas equivalent.


if __name__ == "__main__":
    key = jax.random.PRNGKey(0)
    B = 8
    x = jax.random.normal(jax.random.fold_in(key, 1), (B, 2), dtype=jnp.float32)

    W, mask = init_params()

    # Force the Pallas path (B=8 would otherwise take the small-batch XLA fallback).
    out = pn_neuron_forward(x, W, mask, use_pallas=True)
    out = jax.block_until_ready(out)

    # Pure-JAX reference check of the quadratic form z^T (W*mask) z.
    z = jnp.concatenate([x, jnp.ones((B, 1), dtype=x.dtype)], axis=1)
    ref = jnp.sum((z @ (W * mask)) * z, axis=-1, keepdims=True)
    assert out.shape == (B, 1)
    assert jnp.allclose(out, ref, atol=1e-5), (out, ref)

    # The default dispatch (small-batch XLA fallback) must agree as well.
    out_small = jax.block_until_ready(pn_neuron_forward(x, W, mask))
    assert jnp.allclose(out_small, ref, atol=1e-5), (out_small, ref)

    print("KERNEL_OK")
</pallas_src>

<mosaic_0001>
module attributes {stable_mosaic.version = 11 : i64} {
  func.func @_pn_neuron_kernel(%arg0: i32, %arg1: memref<6xf32, #tpu.memory_space<smem>>, %arg2: memref<2x8x128xf32, #tpu.memory_space<vmem>>, %arg3: memref<8x128xf32, #tpu.memory_space<vmem>>) attributes {dimension_semantics = [#tpu.dimension_semantics<parallel>], iteration_bounds = array<i64: 1>, scalar_prefetch = 0 : i64, scratch_operands = 0 : i64, tpu.core_type = #tpu.core_type<tc>, window_params = [{transform_indices = @transform_0, window_bounds = array<i64: 6>}, {transform_indices = @transform_1, window_bounds = array<i64: 2, 8, 128>}, {transform_indices = @transform_2, window_bounds = array<i64: 8, 128>}]} {
    %c0 = arith.constant 0 : index
    %c0_0 = arith.constant 0 : index
    %c0_1 = arith.constant 0 : index
    %0 = vector.load %arg2[%c0, %c0_0, %c0_1] : memref<2x8x128xf32, #tpu.memory_space<vmem>>, vector<1x8x128xf32>
    %1 = vector.shape_cast %0 : vector<1x8x128xf32> to vector<8x128xf32>
    %c1 = arith.constant 1 : index
    %c0_2 = arith.constant 0 : index
    %c0_3 = arith.constant 0 : index
    %2 = vector.load %arg2[%c1, %c0_2, %c0_3] : memref<2x8x128xf32, #tpu.memory_space<vmem>>, vector<1x8x128xf32>
    %3 = vector.shape_cast %2 : vector<1x8x128xf32> to vector<8x128xf32>
    %c0_4 = arith.constant 0 : index
    %4 = memref.load %arg1[%c0_4] : memref<6xf32, #tpu.memory_space<smem>>
    %c1_5 = arith.constant 1 : index
    %5 = memref.load %arg1[%c1_5] : memref<6xf32, #tpu.memory_space<smem>>
    %c2 = arith.constant 2 : index
    %6 = memref.load %arg1[%c2] : memref<6xf32, #tpu.memory_space<smem>>
    %c3 = arith.constant 3 : index
    %7 = memref.load %arg1[%c3] : memref<6xf32, #tpu.memory_space<smem>>
    %c4 = arith.constant 4 : index
    %8 = memref.load %arg1[%c4] : memref<6xf32, #tpu.memory_space<smem>>
    %c5 = arith.constant 5 : index
    %9 = memref.load %arg1[%c5] : memref<6xf32, #tpu.memory_space<smem>>
    %10 = vector.broadcast %4 : f32 to vector<8x128xf32>
    %11 = arith.mulf %10, %1 : vector<8x128xf32>
    %12 = vector.broadcast %5 : f32 to vector<8x128xf32>
    %13 = arith.mulf %12, %3 : vector<8x128xf32>
    %14 = arith.addf %11, %13 : vector<8x128xf32>
    %15 = vector.broadcast %6 : f32 to vector<8x128xf32>
    %16 = arith.addf %14, %15 : vector<8x128xf32>
    %17 = arith.mulf %16, %1 : vector<8x128xf32>
    %18 = vector.broadcast %7 : f32 to vector<8x128xf32>
    %19 = arith.mulf %18, %3 : vector<8x128xf32>
    %20 = vector.broadcast %8 : f32 to vector<8x128xf32>
    %21 = arith.addf %19, %20 : vector<8x128xf32>
    %22 = arith.mulf %21, %3 : vector<8x128xf32>
    %23 = arith.addf %17, %22 : vector<8x128xf32>
    %24 = vector.broadcast %9 : f32 to vector<8x128xf32>
    %25 = arith.addf %23, %24 : vector<8x128xf32>
    %c0_6 = arith.constant 0 : index
    %c0_7 = arith.constant 0 : index
    %26 = vector.load %arg3[%c0_6, %c0_7] : memref<8x128xf32, #tpu.memory_space<vmem>>, vector<8x128xf32>
    tpu.vector_store %arg3[%c0_6, %c0_7], %25 {strides = array<i32>} : memref<8x128xf32, #tpu.memory_space<vmem>>, vector<8x128xf32>,
    return
  }
  func.func @transform_0(%arg0: i32) -> i32 {
    %c0_i32 = arith.constant 0 : i32
    %c0_i32_0 = arith.constant 0 : i32
    return %c0_i32 : i32
  }
  func.func @transform_1(%arg0: i32) -> (i32, i32, i32) {
    %c0_i32 = arith.constant 0 : i32
    %c0_i32_0 = arith.constant 0 : i32
    %c0_i32_1 = arith.constant 0 : i32
    return %c0_i32, %arg0, %c0_i32_0 : i32, i32, i32
  }
  func.func @transform_2(%arg0: i32) -> (i32, i32) {
    %c0_i32 = arith.constant 0 : i32
    %c0_i32_0 = arith.constant 0 : i32
    return %arg0, %c0_i32 : i32, i32
  }
}

</mosaic_0001>

<bundles_post_ra>
// kernel: mul.1
= control target key start
LH: loop header
LB: loop body
LE: loop exit
PB: predicated region body
PF: predicated region fallthrough
CT: control target
= control target key end

     0   :  { %3 = vsyncpa [#allocation1], 0  ;;  %s46_s9 = smov [#allocation0]   ;;  %s80_s0 = inlined_call_operand.hbm [shape: f32[3,3], index: 0, kind: input, shape index: {}]   ;;  %s81_s1 = inlined_call_operand.vmem [shape: f32[3,3], index: 1, kind: input, shape index: {}]   ;;  %s82_s2 = inlined_call_operand.vmem [shape: f32[3,3], index: 2, kind: output, shape index: {}]  }
   0x1   :  { %s8_s10 = sshll.u32 %s46_s9, 4  ;;  %s22_s13 = scalar_lea.hbm %s80_s0, 64  ;;  %s9_s10 = int_to_ptr.vmem [resolvable:$true] %s8_s10 }
   0x2   :  { %p23_p0 = scmp.ne.s32.totalorder %s80_s0, %s22_s13  ;;  %p26_p1 = scmp.lt.u32.totalorder %s22_s13, %s80_s0 }
   0x4   :  { %p28_p2 = pnand %p26_p1, %p23_p0 }
   0x6   :  { %31 = shalt.err (!%p28_p2)
}
   0x7   :  { %s32_s18 = scalar_lea.vmem %s9_s10, 64  ;;  %p37_p4 = scmp.lt.s32.totalorder %s9_s10, %s9_s10 }
   0x8   :  { %p33_p3 = scmp.ne.s32.totalorder %s9_s10, %s32_s18  ;;  %p38_p5 = scmp.lt.s32.totalorder %s32_s18, %s32_s18 }
   0xa   :  { %p39_p6 = por %p38_p5, %p37_p4 }
   0xc   :  { %p40_p7 = pnand %p39_p6, %p33_p3 }
   0xe   :  { %43 = shalt.err (!%p40_p7)
}
   0xf   :  { %11 = dma.hbm_to_vmem [thread:$0]  %s80_s0, 64, %s9_s10, [#allocation1]  }
  0x10   :  { %44 = dma.done.wait [#allocation1], 64  }
  0x11   :  { %45 = vsyncadd [#allocation1], 4294967232  ;;  %v13_v0 = vld [vmem:[#allocation0] sm:$0x7] }
  0x12   :  { %v14_v1 = vld [vmem:[%s81_s1] sm:$0x7] }
  0x13   :  { %v17_v2 = vmul.f32 %v14_v1, %v13_v0 }
  0x15   :  { %19 = vst [vmem:[%s82_s2] sm:$0xf] %v17_v2 }
  0x16   :  { %20 = vsyncpa [#allocation1], 1 }

// kernel: _pn_neuron_pallas.1
= control target key start
LH: loop header
LB: loop body
LE: loop exit
PB: predicated region body
PF: predicated region fallthrough
CT: control target
= control target key end

     0   :  { %7 = vsyncpa [#allocation3], 0  ;;  %s104_s0 = inlined_call_operand.vmem [shape: f32[6], index: 0, kind: input, shape index: {}]   ;;  %s105_s1 = inlined_call_operand.vmem [shape: f32[2,8,128], index: 1, kind: input, shape index: {}]   ;;  %s106_s2 = inlined_call_operand.vmem [shape: f32[8,128], index: 2, kind: output, shape index: {}]  }
   0x1   :  { %s14_s11 = sshll.u32 %s104_s0, 4  ;;  %s15_s11 = int_to_ptr.vmem [resolvable:$true] %s14_s11 }
   0x2   :  { %s62_s12 = scalar_lea.vmem %s15_s11, 16  ;;  %p67_p1 = scmp.lt.s32.totalorder %s15_s11, %s15_s11 }
   0x3   :  { %p63_p0 = scmp.ne.s32.totalorder %s15_s11, %s62_s12  ;;  %p68_p2 = scmp.lt.s32.totalorder %s62_s12, %s62_s12 }
   0x5   :  { %p69_p3 = por %p68_p2, %p67_p1 }
   0x7   :  { %p70_p4 = pnand %p69_p3, %p63_p0 }
   0x9   :  { %73 = shalt.err (!%p70_p4)
}
   0xa   :  { %s76_s13 = smov [#allocation2]  }
   0xb   :  { %17 = dma.vmem_to_smem %s15_s11, 16, %s76_s13, [#allocation3]  }
   0xc   :  { %74 = dma.done.wait [#allocation3], 16  }
   0xd   :  { %75 = vsyncadd [#allocation3], 4294967280 }
   0xe   :  { %23 = sfence }
   0xf   :  { %s27_s14 = sld [smem:[#allocation2]]  ;;  %s56_s15 = sld [smem:[#allocation2 + $0x1]]  ;;  %v24_v0 = vld [vmem:[%s105_s1] sm:$0xff]  ;;  %v55_v1 = vld [vmem:[%s105_s1 + $0x8] sm:$0xff] }
  0x10   :  { %s57_s16 = sld [smem:[#allocation2 + $0x2]]  ;;  %s58_s17 = sld [smem:[#allocation2 + $0x3]] }
  0x11   :  { %s59_s18 = sld [smem:[#allocation2 + $0x4]]  ;;  %s60_s22 = sld [smem:[#allocation2 + $0x5]] }
  0x15   :  { %v33_v2 = vstv %s27_s14  ;;  %v35_v3 = vstv %s56_s15 }
  0x16   :  { %v34_v4 = vmul.f32 %v33_v2, %v24_v0  ;;  %v36_v5 = vmul.f32 %v55_v1, %v35_v3  ;;  %v41_v6 = vstv %s58_s17  ;;  %v38_v7 = vstv %s57_s16 }
  0x17   :  { %v42_v8 = vmul.f32 %v55_v1, %v41_v6  ;;  %v43_v9 = vstv %s59_s18  ;;  %v47_v15 = vstv %s60_s22 }
  0x18   :  { %v37_v10 = vadd.f32 %v36_v5, %v34_v4 }
  0x19   :  { %v44_v11 = vadd.f32 %v43_v9, %v42_v8 }
  0x1a   :  { %v39_v12 = vadd.f32 %v38_v7, %v37_v10 }
  0x1b   :  { %v45_v13 = vmul.f32 %v55_v1, %v44_v11 }
  0x1c   :  { %v40_v14 = vmul.f32 %v39_v12, %v24_v0 }
  0x1e   :  { %v46_v16 = vadd.f32 %v45_v13, %v40_v14 }
  0x20   :  { %v48_v17 = vadd.f32 %v47_v15, %v46_v16 }
  0x22   :  { %49 = vst [vmem:[%s106_s2] sm:$0xff] %v48_v17 }
  0x23   :  { %54 = vsyncpa [#allocation3], 1 }

</bundles_post_ra>
